<compile_context>
chip_gen: v7x
topology: tpu7x:2x2x1
jax: 0.10.0
libtpu: 0.0.40
codegen_flags: <defaults>
</compile_context>

<pallas_src>
import functools

import jax
import jax.numpy as jnp
from jax.experimental import pallas as pl
from jax.experimental.pallas import tpu as pltpu

_LANES = 128


def channel_attention_kernel(x_ref, w1t_ref, w2t_ref, out_ref,
                             sum_acc, max_acc, *,
                             inv_hw, hw_valid, tile_hw, n_hw, n_ilp):
    # x_ref   : (1, C, tile_hw)  native dtype (f32 / bf16 / ...)
    # w1t_ref : (C, Cr) f32, w2t_ref : (Cr, C) f32  (pre-transposed 1x1 convs)
    # out_ref : (1, 1, C) input dtype
    # sum_acc, max_acc : (1, C, 128) f32 scratch, persistent across the HW axis
    hw_i = pl.program_id(1)

    @pl.when(hw_i == 0)
    def _init():
        sum_acc[...] = jnp.zeros_like(sum_acc)
        max_acc[...] = jnp.full_like(max_acc, -jnp.inf)

    n_chunks = tile_hw // _LANES
    # Chunks that may contain padded lanes (only on the last HW step); decided
    # statically so fully-valid chunks carry no mask cost.
    needs_mask = [(n_hw - 1) * tile_hw + (k + 1) * _LANES > hw_valid
                  for k in range(n_chunks)]
    if any(needs_mask):
        lane = jax.lax.broadcasted_iota(jnp.int32, (1, 1, _LANES), 2)
        base = hw_i * tile_hw

    # VPU-only fold: per-chunk load + upcast straight from the ref (no full
    # f32 copy of the tile), n_ilp independent accumulation chains.
    s_parts = [None] * n_ilp
    m_parts = [None] * n_ilp
    for k in range(n_chunks):
        chunk = x_ref[:, :, pl.ds(k * _LANES, _LANES)].astype(jnp.float32)
        if needs_mask[k]:
            valid = (base + k * _LANES + lane) < hw_valid
            s_chunk = jnp.where(valid, chunk, 0.0)
            m_chunk = jnp.where(valid, chunk, -jnp.inf)
        else:
            s_chunk = chunk
            m_chunk = chunk
        j = k % n_ilp
        if s_parts[j] is None:
            s_parts[j] = s_chunk
            m_parts[j] = m_chunk
        else:
            s_parts[j] = s_parts[j] + s_chunk
            m_parts[j] = jnp.maximum(m_parts[j], m_chunk)

    s = s_parts[0]
    m = m_parts[0]
    for j in range(1, n_ilp):
        if s_parts[j] is not None:
            s = s + s_parts[j]
            m = jnp.maximum(m, m_parts[j])

    sum_acc[...] = sum_acc[...] + s
    max_acc[...] = jnp.maximum(max_acc[...], m)

    @pl.when(hw_i == n_hw - 1)
    def _finalize():
        # One small cross-lane reduce; stack avg/max rows in registers (no
        # scratch round-trip) and run the shared bottleneck MLP on both rows.
        avg = jnp.sum(sum_acc[...], axis=-1) * jnp.float32(inv_hw)   # (1, C)
        mx = jnp.max(max_acc[...], axis=-1)                          # (1, C)
        p = jnp.concatenate([avg, mx], axis=0)                       # (2, C)
        h = jnp.dot(p, w1t_ref[...], preferred_element_type=jnp.float32)
        h = jnp.maximum(h, 0.0)                                      # ReLU
        o = jnp.dot(h, w2t_ref[...], preferred_element_type=jnp.float32)
        att = 0.5 * (o[0:1, :] + o[1:2, :])                          # (1, C)
        out_ref[0] = jax.nn.sigmoid(att).astype(out_ref.dtype)


def _pick_tile_hw(hw_pad, c, itemsize, max_block_bytes):
    """Largest 128-multiple divisor of hw_pad whose (1, C, tile) block fits."""
    n = hw_pad // _LANES
    best = _LANES  # always a divisor of hw_pad (which is padded to 128k)
    for d in range(1, n + 1):
        if n % d == 0 and c * d * _LANES * itemsize <= max_block_bytes:
            best = d * _LANES
    # TODO(synk): tile the channel axis too when C alone blows the byte cap.
    return best


def channel_attention(x_nchw, w1, w2, *, tile_hw=None,
                      max_block_bytes=6 * 1024 * 1024):
    """CBAM channel attention.

    x_nchw: (B, C, H, W); w1: (C//r, C); w2: (C, C//r) — squeezed 1x1-conv
    weights in PyTorch (out, in) layout.  Returns (B, C, 1, 1) in x's dtype.
    """
    B, C, H, W = x_nchw.shape
    HW = H * W
    Cr = w1.shape[0]

    # Contiguous collapse of the spatial dims — free, no data movement.
    x_flat = x_nchw.reshape(B, C, HW)
    itemsize = jnp.dtype(x_flat.dtype).itemsize

    # Pad the spatial axis to a multiple of 128 so every tile is lane-dense;
    # padded lanes are masked out of both sum and max inside the kernel.
    HW_pad = ((HW + _LANES - 1) // _LANES) * _LANES
    if HW_pad != HW:
        x_flat = jnp.pad(x_flat, ((0, 0), (0, 0), (0, HW_pad - HW)))

    if tile_hw is None:
        tile_hw = _pick_tile_hw(HW_pad, C, itemsize, max_block_bytes)
    assert tile_hw % _LANES == 0, "tile_hw must be a multiple of 128"
    assert HW_pad % tile_hw == 0, "tile_hw must divide the padded H*W"

    n_hw = HW_pad // tile_hw
    n_chunks = tile_hw // _LANES
    n_ilp = min(4, n_chunks)

    # Pre-transpose the tiny 1x1-conv weights so there is no in-kernel .T.
    w1t = jnp.asarray(w1, jnp.float32).T   # (C, Cr)
    w2t = jnp.asarray(w2, jnp.float32).T   # (Cr, C)

    kernel = functools.partial(
        channel_attention_kernel,
        inv_hw=1.0 / HW, hw_valid=HW, tile_hw=tile_hw, n_hw=n_hw, n_ilp=n_ilp)

    # Explicit scoped-VMEM budget: double-buffered input block + accumulators
    # + weights + generous headroom, clamped to a value legal on v5e/v6e/v7x.
    block_bytes = C * tile_hw * itemsize
    vmem_limit = int(min(32 * 1024 * 1024,
                         max(16 * 1024 * 1024,
                             2 * block_bytes + 8 * 1024 * 1024)))

    cost = pl.CostEstimate(
        flops=3 * B * C * HW + 8 * B * C * Cr,
        transcendentals=B * C,
        bytes_accessed=(B * C * HW_pad * itemsize
                        + (w1t.size + w2t.size) * 4
                        + B * C * itemsize),
    )

    out = pl.pallas_call(
        kernel,
        out_shape=jax.ShapeDtypeStruct((B, 1, C), x_flat.dtype),
        grid_spec=pltpu.PrefetchScalarGridSpec(
            num_scalar_prefetch=0,
            grid=(B, n_hw),                        # reduction (HW) axis last
            in_specs=[
                pl.BlockSpec((1, C, tile_hw), lambda b, h: (b, 0, h)),
                pl.BlockSpec((C, Cr), lambda b, h: (0, 0)),
                pl.BlockSpec((Cr, C), lambda b, h: (0, 0)),
            ],
            out_specs=pl.BlockSpec((1, 1, C), lambda b, h: (b, 0, 0)),
            scratch_shapes=[
                pltpu.VMEM((1, C, _LANES), jnp.float32),
                pltpu.VMEM((1, C, _LANES), jnp.float32),
            ],
        ),
        compiler_params=pltpu.CompilerParams(
            dimension_semantics=("parallel", "arbitrary"),
            vmem_limit_bytes=vmem_limit),
        cost_estimate=cost,
    )(x_flat, w1t, w2t)

    return out.reshape(B, C, 1, 1)


def reference(x_nchw, w1, w2):
    # Pure-JAX mirror of the PyTorch forward.
    xf = x_nchw.astype(jnp.float32)
    avg_p = jnp.mean(xf, axis=(2, 3))              # (B, C)
    max_p = jnp.max(xf, axis=(2, 3))               # (B, C)

    def fc(p):
        return jnp.maximum(p @ w1.T, 0.0) @ w2.T

    out = 0.5 * fc(avg_p) + 0.5 * fc(max_p)
    return jax.nn.sigmoid(out)[:, :, None, None]


if __name__ == "__main__":
    key = jax.random.PRNGKey(0)
    B, C, H, W = 2, 4, 16, 16
    reduction = 4
    Cr = C // reduction

    kx, k1, k2, k3 = jax.random.split(key, 4)
    x = jax.random.normal(kx, (B, C, H, W), dtype=jnp.float32)
    # 1x1 conv weights (PyTorch (out, in, 1, 1)), squeezed to (out, in).
    w1 = jax.random.normal(k1, (Cr, C), dtype=jnp.float32) * 0.1
    w2 = jax.random.normal(k2, (C, Cr), dtype=jnp.float32) * 0.1
    y_ref = reference(x, w1, w2)

    # 1) Default tiling (single HW step per batch for this small shape).
    y = jax.block_until_ready(channel_attention(x, w1, w2))
    assert y.shape == (B, C, 1, 1)
    assert jnp.allclose(y, y_ref, atol=1e-5, rtol=1e-5), "f32 mismatch (auto tile)"

    # 2) Forced tile_hw=128 -> 2 HW grid steps, exercising the accumulators.
    y2 = jax.block_until_ready(channel_attention(x, w1, w2, tile_hw=128))
    assert jnp.allclose(y2, y_ref, atol=1e-5, rtol=1e-5), "f32 mismatch (tile=128)"

    # 3) Non-128-divisible spatial extent -> wrapper pad + in-kernel lane mask.
    xo = jax.random.normal(k3, (B, C, 10, 10), dtype=jnp.float32)
    yo = jax.block_until_ready(channel_attention(xo, w1, w2))
    yo_ref = reference(xo, w1, w2)
    assert jnp.allclose(yo, yo_ref, atol=1e-5, rtol=1e-5), "f32 mismatch (padded HW)"

    # 4) Native-bf16 input: per-chunk upcast inside the kernel, f32 accumulate.
    y_bf16 = jax.block_until_ready(
        channel_attention(x.astype(jnp.bfloat16), w1, w2, tile_hw=128))
    assert jnp.allclose(y_bf16.astype(jnp.float32), y_ref, atol=3e-2, rtol=3e-2), \
        "bf16 mismatch vs reference"

    print("KERNEL_OK")
</pallas_src>

<mosaic_0001>
module attributes {stable_mosaic.version = 11 : i64} {
  func.func @channel_attention_kernel(%arg0: i32, %arg1: i32, %arg2: memref<1x4x256xf32, #tpu.memory_space<vmem>>, %arg3: memref<4x1xf32, #tpu.memory_space<vmem>>, %arg4: memref<1x4xf32, #tpu.memory_space<vmem>>, %arg5: memref<1x1x4xf32, #tpu.memory_space<vmem>>, %arg6: memref<1x4x128xf32, #tpu.memory_space<vmem>>, %arg7: memref<1x4x128xf32, #tpu.memory_space<vmem>>) attributes {dimension_semantics = [#tpu.dimension_semantics<parallel>, #tpu.dimension_semantics<arbitrary>], iteration_bounds = array<i64: 2, 1>, scalar_prefetch = 0 : i64, scratch_operands = 2 : i64, tpu.core_type = #tpu.core_type<tc>, window_params = [{transform_indices = @transform_0, window_bounds = array<i64: 1, 4, 256>}, {pipeline_mode = #tpu.pipeline_mode<synchronous>, transform_indices = @transform_1, window_bounds = array<i64: 4, 1>}, {pipeline_mode = #tpu.pipeline_mode<synchronous>, transform_indices = @transform_2, window_bounds = array<i64: 1, 4>}, {transform_indices = @transform_3, window_bounds = array<i64: 1, 1, 4>}]} {
    %c0_i32 = arith.constant 0 : i32
    %0 = arith.cmpi eq, %arg1, %c0_i32 : i32
    %1 = arith.extui %0 : i1 to i32
    %c0_i32_0 = arith.constant 0 : i32
    %2 = arith.cmpi ne, %1, %c0_i32_0 : i32
    scf.if %2 {
      %cst = arith.constant 0.000000e+00 : f32
      %16 = vector.broadcast %cst : f32 to vector<1x4x128xf32>
      %c0_19 = arith.constant 0 : index
      %c0_20 = arith.constant 0 : index
      %c0_21 = arith.constant 0 : index
      %17 = vector.load %arg6[%c0_19, %c0_20, %c0_21] : memref<1x4x128xf32, #tpu.memory_space<vmem>>, vector<1x4x128xf32>
      tpu.vector_store %arg6[%c0_19, %c0_20, %c0_21], %16 {strides = array<i32>} : memref<1x4x128xf32, #tpu.memory_space<vmem>>, vector<1x4x128xf32>,
      %cst_22 = arith.constant 0xFF800000 : f32
      %18 = vector.broadcast %cst_22 : f32 to vector<1x4x128xf32>
      %c0_23 = arith.constant 0 : index
      %c0_24 = arith.constant 0 : index
      %c0_25 = arith.constant 0 : index
      %19 = vector.load %arg7[%c0_23, %c0_24, %c0_25] : memref<1x4x128xf32, #tpu.memory_space<vmem>>, vector<1x4x128xf32>
      tpu.vector_store %arg7[%c0_23, %c0_24, %c0_25], %18 {strides = array<i32>} : memref<1x4x128xf32, #tpu.memory_space<vmem>>, vector<1x4x128xf32>,
    } else {
    }
    %c0 = arith.constant 0 : index
    %c0_1 = arith.constant 0 : index
    %c0_2 = arith.constant 0 : index
    %3 = vector.load %arg2[%c0, %c0_1, %c0_2] : memref<1x4x256xf32, #tpu.memory_space<vmem>>, vector<1x4x128xf32>
    %c0_3 = arith.constant 0 : index
    %c0_4 = arith.constant 0 : index
    %c128 = arith.constant 128 : index
    %4 = vector.load %arg2[%c0_3, %c0_4, %c128] : memref<1x4x256xf32, #tpu.memory_space<vmem>>, vector<1x4x128xf32>
    %5 = arith.addf %3, %4 : vector<1x4x128xf32>
    %6 = arith.maximumf %3, %4 : vector<1x4x128xf32>
    %c0_5 = arith.constant 0 : index
    %c0_6 = arith.constant 0 : index
    %c0_7 = arith.constant 0 : index
    %7 = vector.load %arg6[%c0_5, %c0_6, %c0_7] : memref<1x4x128xf32, #tpu.memory_space<vmem>>, vector<1x4x128xf32>
    %8 = arith.addf %7, %5 : vector<1x4x128xf32>
    %c0_8 = arith.constant 0 : index
    %c0_9 = arith.constant 0 : index
    %c0_10 = arith.constant 0 : index
    %9 = vector.load %arg6[%c0_8, %c0_9, %c0_10] : memref<1x4x128xf32, #tpu.memory_space<vmem>>, vector<1x4x128xf32>
    tpu.vector_store %arg6[%c0_8, %c0_9, %c0_10], %8 {strides = array<i32>} : memref<1x4x128xf32, #tpu.memory_space<vmem>>, vector<1x4x128xf32>,
    %c0_11 = arith.constant 0 : index
    %c0_12 = arith.constant 0 : index
    %c0_13 = arith.constant 0 : index
    %10 = vector.load %arg7[%c0_11, %c0_12, %c0_13] : memref<1x4x128xf32, #tpu.memory_space<vmem>>, vector<1x4x128xf32>
    %11 = arith.maximumf %10, %6 : vector<1x4x128xf32>
    %c0_14 = arith.constant 0 : index
    %c0_15 = arith.constant 0 : index
    %c0_16 = arith.constant 0 : index
    %12 = vector.load %arg7[%c0_14, %c0_15, %c0_16] : memref<1x4x128xf32, #tpu.memory_space<vmem>>, vector<1x4x128xf32>
    tpu.vector_store %arg7[%c0_14, %c0_15, %c0_16], %11 {strides = array<i32>} : memref<1x4x128xf32, #tpu.memory_space<vmem>>, vector<1x4x128xf32>,
    %c0_i32_17 = arith.constant 0 : i32
    %13 = arith.cmpi eq, %arg1, %c0_i32_17 : i32
    %14 = arith.extui %13 : i1 to i32
    %c0_i32_18 = arith.constant 0 : i32
    %15 = arith.cmpi ne, %14, %c0_i32_18 : i32
    scf.if %15 {
      %c0_19 = arith.constant 0 : index
      %c0_20 = arith.constant 0 : index
      %c0_21 = arith.constant 0 : index
      %16 = vector.load %arg6[%c0_19, %c0_20, %c0_21] : memref<1x4x128xf32, #tpu.memory_space<vmem>>, vector<1x4x128xf32>
      %cst = arith.constant dense<0.000000e+00> : vector<1x4xf32>
      %17 = vector.multi_reduction <add>, %16, %cst [2] : vector<1x4x128xf32> to vector<1x4xf32>
      %cst_22 = arith.constant 3.906250e-03 : f32
      %18 = vector.broadcast %cst_22 : f32 to vector<1x4xf32>
      %19 = arith.mulf %17, %18 : vector<1x4xf32>
      %c0_23 = arith.constant 0 : index
      %c0_24 = arith.constant 0 : index
      %c0_25 = arith.constant 0 : index
      %20 = vector.load %arg7[%c0_23, %c0_24, %c0_25] : memref<1x4x128xf32, #tpu.memory_space<vmem>>, vector<1x4x128xf32>
      %cst_26 = arith.constant dense<0xFF800000> : vector<1x4xf32>
      %21 = vector.multi_reduction <maximumf>, %20, %cst_26 [2] : vector<1x4x128xf32> to vector<1x4xf32>
      %22 = tpu.concatenate %19, %21 in 0 : vector<1x4xf32>, vector<1x4xf32> -> vector<2x4xf32>
      %c0_27 = arith.constant 0 : index
      %c0_28 = arith.constant 0 : index
      %23 = vector.load %arg3[%c0_27, %c0_28] : memref<4x1xf32, #tpu.memory_space<vmem>>, vector<4x1xf32>
      %cst_29 = arith.constant dense<0.000000e+00> : vector<2x1xf32>
      %24 = tpu.matmul %22, %23, %cst_29 {dimension_numbers = #tpu.dot_dimension_numbers<[1], [0], [0], [1], [0, 0, 1, 1], [], []>} : vector<2x4xf32>, vector<4x1xf32>, vector<2x1xf32> -> vector<2x1xf32>
      %cst_30 = arith.constant 0.000000e+00 : f32
      %25 = vector.broadcast %cst_30 : f32 to vector<2x1xf32>
      %26 = arith.maximumf %24, %25 : vector<2x1xf32>
      %c0_31 = arith.constant 0 : index
      %c0_32 = arith.constant 0 : index
      %27 = vector.load %arg4[%c0_31, %c0_32] : memref<1x4xf32, #tpu.memory_space<vmem>>, vector<1x4xf32>
      %cst_33 = arith.constant dense<0.000000e+00> : vector<2x4xf32>
      %28 = tpu.matmul %26, %27, %cst_33 {dimension_numbers = #tpu.dot_dimension_numbers<[1], [0], [0], [1], [0, 0, 1, 1], [], []>} : vector<2x1xf32>, vector<1x4xf32>, vector<2x4xf32> -> vector<2x4xf32>
      %29 = vector.extract_strided_slice %28 {offsets = [0, 0], sizes = [1, 4], strides = [1, 1]} : vector<2x4xf32> to vector<1x4xf32>
      %30 = vector.extract_strided_slice %28 {offsets = [1, 0], sizes = [1, 4], strides = [1, 1]} : vector<2x4xf32> to vector<1x4xf32>
      %31 = arith.addf %29, %30 : vector<1x4xf32>
      %cst_34 = arith.constant 5.000000e-01 : f32
      %32 = vector.broadcast %cst_34 : f32 to vector<1x4xf32>
      %33 = arith.mulf %32, %31 : vector<1x4xf32>
      %34 = arith.negf %33 : vector<1x4xf32>
      %35 = math.exp %34 : vector<1x4xf32>
      %cst_35 = arith.constant 1.000000e+00 : f32
      %36 = vector.broadcast %cst_35 : f32 to vector<1x4xf32>
      %37 = arith.addf %36, %35 : vector<1x4xf32>
      %38 = arith.divf %36, %37 : vector<1x4xf32>
      %c0_36 = arith.constant 0 : index
      %c0_37 = arith.constant 0 : index
      %c0_38 = arith.constant 0 : index
      %39 = vector.load %arg5[%c0_36, %c0_37, %c0_38] : memref<1x1x4xf32, #tpu.memory_space<vmem>>, vector<1x1x4xf32>
      %40 = vector.shape_cast %39 : vector<1x1x4xf32> to vector<1x4xf32>
      %41 = vector.shape_cast %38 : vector<1x4xf32> to vector<1x1x4xf32>
      tpu.vector_store %arg5[%c0_36, %c0_37, %c0_38], %41 {strides = array<i32>} : memref<1x1x4xf32, #tpu.memory_space<vmem>>, vector<1x1x4xf32>,
    } else {
    }
    return
  }
  func.func @transform_0(%arg0: i32, %arg1: i32) -> (i32, i32, i32) {
    %c0_i32 = arith.constant 0 : i32
    %c0_i32_0 = arith.constant 0 : i32
    return %arg0, %c0_i32, %arg1 : i32, i32, i32
  }
  func.func @transform_1(%arg0: i32, %arg1: i32) -> (i32, i32) {
    %c0_i32 = arith.constant 0 : i32
    %c0_i32_0 = arith.constant 0 : i32
    %c0_i32_1 = arith.constant 0 : i32
    return %c0_i32, %c0_i32_0 : i32, i32
  }
  func.func @transform_2(%arg0: i32, %arg1: i32) -> (i32, i32) {
    %c0_i32 = arith.constant 0 : i32
    %c0_i32_0 = arith.constant 0 : i32
    %c0_i32_1 = arith.constant 0 : i32
    return %c0_i32, %c0_i32_0 : i32, i32
  }
  func.func @transform_3(%arg0: i32, %arg1: i32) -> (i32, i32, i32) {
    %c0_i32 = arith.constant 0 : i32
    %c0_i32_0 = arith.constant 0 : i32
    %c0_i32_1 = arith.constant 0 : i32
    return %arg0, %c0_i32, %c0_i32_0 : i32, i32, i32
  }
}

</mosaic_0001>

<bundles_post_ra>
// kernel: tpu_custom_call.1
= control target key start
LH: loop header
LB: loop body
LE: loop exit
PB: predicated region body
PF: predicated region fallthrough
CT: control target
= control target key end

     0   :  { %8 = vsyncpa [#allocation5], 0  ;;  %s927_s0 = inlined_call_operand.hbm [shape: f32[2,4,256], index: 0, kind: input, shape index: {}]   ;;  %s928_s1 = inlined_call_operand.vmem [shape: f32[4,1], index: 1, kind: input, shape index: {}]   ;;  %s929_s2 = inlined_call_operand.vmem [shape: f32[1,4], index: 2, kind: input, shape index: {}]   ;;  %s930_s3 = inlined_call_operand.hbm [shape: f32[2,1,4], index: 3, kind: output, shape index: {}]  }
   0x1   :  { %10 = vsyncpa [#allocation5 + $0x1], 0 }
   0x2   :  { %11 = vsyncpa [#allocation6], 0 }
   0x3   :  { %13 = vsyncpa [#allocation6 + $0x1], 0  ;;  %s748_s12 = smov 0   ;;  %s750_s13 = smov 0  }
   0x4   :  { %s752_s14 = smov 0   ;;  %s754_s15 = smov 0  }
   0x5   :  { %s756_s16 = smov 0   ;;  %s758_s17 = smov 0  }
   0x6 LB: > { %s508_s18 = sadd.s32 4294967295, %s721_s17   ;;  %s509_s19 = sadd.s32 4294967294, %s721_s17   ;;  %s721_s17 = sphi %s758_s17, %s19_s17   ;;  %s717_s16 = sphi %s756_s16, %s946_s16   ;;  %s713_s15 = sphi %s754_s15, %s945_s15   ;;  %s709_s14 = sphi %s752_s14, %s944_s14   ;;  %s705_s13 = sphi %s750_s13, %s943_s13   ;;  %s701_s12 = sphi %s748_s12, %s942_s12  }
   0x7   : > { %s31_s20 = sadd.s32 1, %s717_s16  ;;  %s40_s21 = sadd.s32 1, %s709_s14 }
   0x8   : > { %p33_p0 = scmp.ge.s32.totalorder %s31_s20, 2  ;;  %p47_p1 = scmp.ne.s32.totalorder %s709_s14, %s705_s13 }
   0x9   : > { %p48_p2 = scmp.eq.s32.totalorder %s721_s17, 0  ;;  %p53_p3 = scmp.ne.s32.totalorder %s705_s13, %s701_s12 }
   0xa   : > { %s948_s20 = smov (%p33_p0, %s31_s20), 0  ;;  %p54_p5 = scmp.eq.s32.totalorder %s508_s18, 0 }
   0xb   : > { %p789_p4 = por %p48_p2, %p47_p1  ;;  %s35_s23 = ssub.s32 %s717_s16, %s948_s20 }
   0xc   : > { %p119_p6 = scmp.eq.s32.totalorder %s508_s18, 1  ;;  %p38_p7 = scmp.eq.s32.totalorder %s35_s23, 0 }
   0xd   : > { %p795_p8 = por %p54_p5, %p53_p3  ;;  %p125_p10 = scmp.eq.s32.totalorder %s509_s19, 1 }
   0xe   : > { %p799_p9 = por %p119_p6, %p47_p1  ;;  %p552_p13 = scmp.lt.s32.totalorder %s721_s17, 2 }
   0xf   : > { %s804_s26 = scalar_select %p38_p7, %s709_s14, %s40_s21  }
  0x10   : > { %s934_s25 = scalar_select %p799_p9, 1, 0 }
  0x11   : > { %p806_p11 = por %p125_p10, %p53_p3  ;;  %s151_s28 = sand.u32 1, %s709_s14  }
  0x12   : > { %s512_s29 = sshll.u32 %s151_s28, 3  ;;  %s525_s30 = sshll.u32 %s717_s16, 7 }
  0x13   : > { %s935_s27 = scalar_select %p806_p11, 1, 0 }
  0x14   : > { %s817_s6 = scalar_lea.hbm %s927_s0, %s525_s30  ;;  %s155_s7 = scalar_lea.vmem [#allocation4], %s512_s29 }
  0x15   : > { %s165_s8 = sshll.u32 %s155_s7, 4  ;;  %p823_p0 = pnand %p552_p13, %p789_p4  ;;  %s819_s8 = int_to_ptr.vmem [resolvable:$true] %s165_s8 }
  0x16   : > { %s152_s10 = scalar_lea.sflag [#allocation5], %s151_s28  ;;  %s609_s11 = scalar_lea.hbm %s817_s6, 128 }
  0x17   : > { %p610_p3 = scmp.ne.s32.totalorder %s817_s6, %s609_s11  ;;  %p611_p5 = pneg %p823_p0 }
  0x18   : > { %s614_s21 = scalar_lea.hbm %s927_s0, 256  ;;  %p615_p4 = scmp.lt.u32.totalorder %s817_s6, %s927_s0 }
  0x19   : > { %p612_p6 = pnand %p611_p5, %p610_p3  ;;  %p616_p10 = scmp.lt.u32.totalorder %s614_s21, %s609_s11 }
  0x1a   : > { %p618_p12 = scmp.lt.u32.totalorder %s609_s11, %s817_s6 }
  0x1b   : > { %p613_p7 = pneg %p612_p6  ;;  %p617_p13 = por %p616_p10, %p615_p4 }
  0x1d   : > { %p619_p1 = por %p618_p12, %p617_p13 }
  0x1f   : > { %p620_p2 = pnand %p619_p1, %p613_p7 }
  0x21   : > { %623 = shalt.err (!%p620_p2)
}
  0x22   : > { %s624_s28 = scalar_lea.vmem %s819_s8, 128  ;;  %s723_s29 = smov [#allocation4]  }
  0x23   : > { %p625_p3 = scmp.ne.s32.totalorder %s819_s8, %s624_s28  ;;  %s629_s30 = sshll.u32 %s723_s29, 4  ;;  %s630_s30 = int_to_ptr.vmem [resolvable:$false] %s629_s30 }
  0x24   : > { %s631_s4 = scalar_lea.vmem %s630_s30, 256  ;;  %p632_p9 = scmp.lt.s32.totalorder %s819_s8, %s630_s30 }
  0x25   : > { %p627_p6 = pnand %p625_p3, %p611_p5  ;;  %p633_p4 = scmp.lt.s32.totalorder %s631_s4, %s624_s28 }
  0x27   : > { %p628_p11 = pneg %p627_p6  ;;  %p634_p10 = por %p633_p4, %p632_p9 }
  0x29   : > { %p635_p12 = pnand %p634_p10, %p628_p11 }
  0x2b   : > { %638 = shalt.err (!%p635_p12)
}
  0x2c   : > { %547 = dma.hbm_to_vmem [thread:$0]  (!%p823_p0), %s817_s6, 128, %s819_s8, %s152_s10  }
  0x2d   : > { %p937_p1 = scmp.lt.s32.totalorder %s721_s17, 3  ;;  %p938_p2 = scmp.ge.s32.totalorder %s721_s17, 1 }
  0x2f   : > { %p171_p5 = pnand %p938_p2, %p937_p1 }
  0x30   : > { %s859_s5 = sand.u32 (!%p171_p5), 1, %s705_s13  }
  0x31   : > { %174 = sbr.rel (%p171_p5) target bundleno = 698 (0x2ba), region = 32  ;;  %s516_s7 = sshll.u32 (!%p171_p5), %s859_s5, 3 }
  0x32   : > { %s177_s11 = scalar_lea.sflag (!%p171_p5), [#allocation5], %s859_s5  ;;  %s180_s18 = scalar_lea.vmem (!%p171_p5), [#allocation4], %s516_s7 }
  0x38   : > { %692 = dma.done.wait (%p795_p8), %s177_s11, 128  }
  0x39   : > { %694 = vsyncadd (%p795_p8), %s177_s11, 4294967168  ;;  %v724_v0 = vmov 0.0   ;;  %v725_v1 = vmov -inf   ;;  %v209_v2 = vld [vmem:[%s180_s18] sm:$0xf]  ;;  %vm223_vm0 = vcmask 1043456   ;;  %v233_v15 = vlaneseq }
  0x3a   : > { %207 = vst [vmem:[#allocation2] sm:$0xf] %v724_v0  ;;  %208 = vst [vmem:[#allocation3] sm:$0xf] %v725_v1  ;;  %530 = vmatprep.subr.mxu0 %v724_v0  ;;  %535 = vmatprep.subr.mxu1 %v724_v0  ;;  %v210_v3 = vld [vmem:[%s180_s18 + $0x4] sm:$0xf] }
  0x3b   : > { %v211_v4 = vadd.f32 %v210_v3, %v209_v2  ;;  %v212_v6 = vmax.f32 %v209_v2, %v210_v3  ;;  %v248_v14 = vld [vmem:[%s928_s1] sm:$0xf]  ;;  %vm726_vm1 = vmmov 0   ;;  %v234_v16 = vand.u32 127, %v233_v15  ;;  %s522_s10 = sshll.u32 %s713_s15, 4  ;;  %s201_s19 = scalar_lea.vmem [#allocation7], %s859_s5 }
  0x3c   : > { %531 = vmatpush3.msk.msra.mxu0 %vm223_vm0, %v248_v14  ;;  %532 = vmatprep.mubr.msk.f32.mxu0 %vm726_vm1, %v724_v0  ;;  %v236_v17 = vshrl.u32 %v233_v15, 7  ;;  %vm246_vm2 = vcmask 1040384   ;;  %vm249_vm3 = vcmask 31744   ;;  %v327_v25 = vld [vmem:[%s929_s2] sm:$0x1]  ;;  %vm328_vm4 = vcmask 7168   ;;  %s878_s28 = scalar_lea.hbm %s930_s3, %s522_s10 }
  0x3d   : > { %537 = vmatprep.mubr.msk.f32.mxu1 %vm726_vm1, %v724_v0  ;;  %536 = vmatpush3.msk.msra.mxu1 %vm246_vm2, %v327_v25  ;;  %s431_s21 = sshll.u32 %s201_s19, 4  ;;  %vm416_vm5 = vcmask 24576   ;;  %s419_s29 = scalar_lea.sflag [#allocation6], %s859_s5  ;;  %s880_s21 = int_to_ptr.vmem [resolvable:$true] %s431_s21 }
  0x3e   : > { %v237_v19 = vsub.s32 %v234_v16, %v236_v17  ;;  %s639_s30 = scalar_lea.vmem %s880_s21, 16  ;;  %p939_p9 = scmp.ne.s32.totalorder %s934_s25, 0 }
  0x3f   : > { %p640_p8 = scmp.ne.s32.totalorder %s880_s21, %s639_s30  ;;  %s727_s15 = smov [#allocation7]  }
  0x40   : > { %s643_s4 = sshll.u32 %s727_s15, 4  ;;  %s644_s4 = int_to_ptr.vmem [resolvable:$false] %s643_s4 }
  0x41   : > { %v213_v5 = vld [vmem:[#allocation2] sm:$0xf]  ;;  %v216_v7 = vld [vmem:[#allocation3] sm:$0xf]  ;;  %p641_p11 = pnand %p640_p8, %p939_p9  ;;  %s645_s7 = scalar_lea.vmem %s644_s4, 32 }
  0x42   : > { %v214_v8 = vadd.f32 %v213_v5, %v211_v4  ;;  %v217_v9 = vmax.f32 %v216_v7, %v212_v6  ;;  %p646_p7 = scmp.lt.s32.totalorder %s880_s21, %s644_s4  ;;  %p647_p13 = scmp.lt.s32.totalorder %s645_s7, %s639_s30 }
  0x43   : > { %p642_p0 = pneg %p641_p11 }
  0x44   : > { %215 = vst [vmem:[#allocation2] sm:$0xf] %v214_v8  ;;  %218 = vst [vmem:[#allocation3] sm:$0xf] %v217_v9  ;;  %p648_p3 = por %p647_p13, %p646_p7 }
  0x46   : > { %p649_p6 = pnand %p648_p3, %p642_p0 }
  0x4b   : > { %v222_v10 = vld [vmem:[#allocation2] sm:$0xf]  ;;  %v228_v11 = vld [vmem:[#allocation3] sm:$0xf] }
  0x4c   : > { %v224_v12 = vsel %vm223_vm0, %v222_v10, 0.0  ;;  %v229_v13 = vsel %vm223_vm0, %v228_v11, -inf }
  0x4d   : > { %225 = vadd.xlane.f32.xlu0 %v224_v12 }
  0x51   : > { %230 = vmax.xlane.f32.xlu0 %v229_v13 }
  0xda   : > { %v226_v18 = vpop.xlane.xlu0 %225 }
  0xdb   : > { %v227_v20 = vmul.f32 0.00390625, %v226_v18 }
  0xdd   : > { %v238_v22 = vrot.slane %v227_v20, %v237_v19 }
  0xde   : > { %v231_v21 = vpop.xlane.xlu0 %230 }
  0xdf   : > { %v244_v23 = vrot.slane %v231_v21, %v237_v19 }
  0xe1   : > { %v247_v24 = vsel %vm246_vm2, %v238_v22, %v244_v23 }
  0xe2   : > { %533 = vmatmul.mubr.msk.f32.vlgmr.msra.gmra.mrb[0].mxu0 %vm249_vm3, %v247_v24 }
 0x1b5   : > { %v322_v26 = vpop.f32.mrb[0].mxu0 }
 0x1b6   : > { %v326_v27 = vmax.f32 %v322_v26, 0.0  ;;  %v534_v28 = vpop.f32.mrb[1].mxu0 }
 0x1b8   : > { %538 = vmatmul.mubr.msk.f32.vlgmr.msra.gmra.mrb[0].mxu1 %vm328_vm4, %v326_v27 }
 0x28b   : > { %v401_v29 = vpop.f32.mrb[0].mxu1 }
 0x28c   : > { %v406_v30 = vrot.slane %v401_v29, 1  ;;  %v539_v31 = vpop.f32.mrb[1].mxu1 }
 0x28e   : > { %v408_v32 = vadd.f32 %v406_v30, %v401_v29 }
 0x290   : > { %v521_v33 = vmul.f32 -0.5, %v408_v32 }
 0x292   : > { %v411_v34 = vmul.f32 1.442695, %v521_v33 }
 0x294   : > { %605 = vpow2.f32 %v411_v34 }
 0x29e   : > { %v606_v35 = vpop.eup %605 }
 0x29f   : > { %v413_v36 = vadd.f32 1.0, %v606_v35 }
 0x2a1   : > { %607 = vrcp.f32 %v413_v36 }
 0x2ab   : > { %v608_v37 = vpop.eup %607 }
 0x2ac   : > { %417 = vst.msk [vmem:[%s201_s19] sm:$0x1] %vm416_vm5, %v608_v37 }
 0x2ad   : > { %652 = shalt.err (!%p649_p6)
}
 0x2ae   : > { %s653_s5 = scalar_lea.hbm %s878_s28, 16  ;;  %s657_s24 = scalar_lea.hbm %s930_s3, 32 }
 0x2af   : > { %p654_p4 = scmp.ne.s32.totalorder %s878_s28, %s653_s5  ;;  %p658_p1 = scmp.lt.u32.totalorder %s878_s28, %s930_s3 }
 0x2b0   : > { %p659_p2 = scmp.lt.u32.totalorder %s657_s24, %s653_s5  ;;  %p661_p8 = scmp.lt.u32.totalorder %s653_s5, %s878_s28 }
 0x2b1   : > { %p655_p10 = pnand %p654_p4, %p939_p9 }
 0x2b2   : > { %p660_p5 = por %p659_p2, %p658_p1 }
 0x2b3   : > { %p656_p12 = pneg %p655_p10 }
 0x2b4   : > { %p662_p11 = por %p661_p8, %p660_p5 }
 0x2b6   : > { %p663_p0 = pnand %p662_p11, %p656_p12 }
 0x2b8   : > { %666 = shalt.err (!%p663_p0)
}
 0x2b9   : > { %542 = dma.vmem_to_hbm [thread:$0]  (%p939_p9), %s880_s21, 16, %s878_s28, %s419_s29  }
 0x2ba PF: > { %s443_s9 = sand.u32 1, %s701_s12   ;;  %p940_p7 = scmp.ne.s32.totalorder %s935_s27, 0 }
 0x2bb   : > { %p941_p13 = scmp.ge.s32.totalorder %s721_s17, 2  ;;  %s444_s10 = scalar_lea.sflag [#allocation6], %s443_s9 }
 0x2bd   : > { %p549_p3 = pnand %p941_p13, %p940_p7 }
 0x2bf   : > { %696 = dma.done.wait (!%p549_p3), %s444_s10, 16  }
 0x2c0   : > { %698 = vsyncadd (!%p549_p3), %s444_s10, 4294967280  ;;  %s19_s17 = sadd.s32 1, %s721_s17   ;;  %s942_s12 = smov %s705_s13 }
 0x2c1   : > { %p16_p6 = scmp.ge.s32.totalorder %s19_s17, 4   ;;  %s943_s13 = smov %s709_s14 }
 0x2c2   : > { %s944_s14 = smov %s804_s26  ;;  %s945_s15 = smov %s717_s16 }
 0x2c3   : > { %s946_s16 = smov %s948_s20  ;;  %18 = sbr.rel (!%p16_p6) target bundleno = 6 (0x6), region = 85 }
 0x2ca   :  { %448 = vsyncpa [#allocation5], 1 }
 0x2cb   :  { %450 = vsyncpa [#allocation5 + $0x1], 1 }
 0x2cc   :  { %451 = vsyncpa [#allocation6], 1 }
 0x2cd   :  { %453 = vsyncpa [#allocation6 + $0x1], 1 }

</bundles_post_ra>
